<compile_context>
chip_gen: v5e
topology: v5e:2x2
jax: 0.10.0
libtpu: 0.0.40
codegen_flags: <defaults>
</compile_context>

<pallas_src>
import jax
import jax.numpy as jnp
import numpy as np
from jax.experimental import pallas as pl
from jax.experimental.pallas import tpu as pltpu


def _active_taps(kernel_size, mask_type="A"):
    """Conv taps that survive the PixelCNN causal mask (the rest are zero)."""
    pad = kernel_size // 2
    keep = []
    for ky in range(kernel_size):
        for kx in range(kernel_size):
            if ky < pad or (ky == pad and kx < pad + (1 if mask_type == "B" else 0)):
                keep.append((ky, kx))
    return keep


def _make_kernel(offsets, half):
    """Pallas kernel closure for a fixed (static) set of tap lane shifts."""

    def kernel(x_ref, w_ref, b_ref, scale_ref, bias_ref, m_ref, o_ref):
        # x_ref     : (nb*Cin, HW)           NCHW flattened (row = image*Cin + chan)
        # w_ref     : (2*nb*Cout, T*nb*Cin)  image-block-diagonal im2col weights;
        #                                    rows [0, nb*Cout) = tanh half (x2 pre-scaled),
        #                                    rows [nb*Cout, 2*nb*Cout) = sigmoid half
        # b_ref     : (2*nb*Cout, 1)         conv bias, split/scaled the same way
        # scale_ref : (nb*Cout, 1)           folded inference-BatchNorm scale
        # bias_ref  : (nb*Cout, 1)           folded inference-BatchNorm bias
        # m_ref     : (T, 1, HW)             per-tap edge-validity masks (unshifted)
        # o_ref     : (nb*Cout, HW)
        x = x_ref[...]

        # Stage the active taps: a per-row lane rotation (XLU) + edge mask (VPU).
        # Rows are independent (image, channel) pixel vectors, so the roll never
        # mixes images, and wrap-around lanes (p < off) are always out-of-image
        # neighbours, which the mask zeroes.  Everything stays a full-tile op.
        blocks = []
        for t, off in enumerate(offsets):
            shifted = x if off == 0 else pltpu.roll(x, shift=off, axis=1)
            blocks.append(shifted * m_ref[t])
        cols = jnp.concatenate(blocks, axis=0)               # (T*nb*Cin, HW)

        # One MXU contraction for the whole batch and both gate halves.
        acc = jnp.dot(w_ref[...], cols,
                      preferred_element_type=jnp.float32) + b_ref[...]

        # Single EUP pass over the full block: tanh(z) = 2*sigmoid(2z) - 1
        # (the tanh-half rows of w/b were pre-scaled by 2 in the wrapper).
        sig = jax.nn.sigmoid(acc)                             # (2*nb*Cout, HW)
        xf = 2.0 * sig[:half] - 1.0                           # tanh half
        xg = sig[half:]                                       # sigmoid half
        gated = xf * xg                                       # (nb*Cout, HW)

        # Inference BatchNorm (folded affine) + residual add (Cin == Cout).
        # TODO(synk): training-mode batch statistics are not computed in-kernel.
        o_ref[...] = x + gated * scale_ref[...] + bias_ref[...]

    return kernel


def gated_res_forward(x_nchw, w, b, bn_scale, bn_bias, *,
                      mask_type="A", images_per_step=None):
    """GatedRes forward (inference BN), in_channels == out_channels.

    x_nchw   : (N, C, H, W) float32
    w        : (k, k, Cin, 2*Cout) float32 masked-conv weight (HWIO, mask applied)
    b        : (2*Cout,) float32
    bn_scale / bn_bias : (Cout,) folded BatchNorm2d affine
    """
    N, Cin, H, W = x_nchw.shape
    k = w.shape[0]
    C2 = w.shape[3]
    Cout = C2 // 2
    assert Cin == Cout, "this config has in_channels == out_channels (no shortcut conv)"
    # TODO(synk): the shortcut 1x1-conv path (in_channels != out_channels) and the
    #             aux-input path of GatedRes are not implemented.
    pad = k // 2
    HW = H * W
    nb = N if images_per_step is None else images_per_step
    assert N % nb == 0

    # --- static tap bookkeeping (tiny, numpy / constant-foldable) -----------
    hh = np.arange(H).reshape(H, 1)
    ww = np.arange(W).reshape(1, W)
    offsets, mask_rows, kept = [], [], []
    for (ky, kx) in _active_taps(k, mask_type):
        dy, dx = ky - pad, kx - pad
        off = -(dy * W + dx)                      # lane right-shift in flattened H*W
        valid = ((hh + dy >= 0) & (hh + dy < H) &
                 (ww + dx >= 0) & (ww + dx < W)).astype(np.float32).reshape(1, HW)
        if off < 0 or off >= HW or not valid.any():
            continue                              # degenerate tap at tiny H/W
        offsets.append(int(off))                  # off == 0 (type 'B' centre) kept
        mask_rows.append(valid)
        kept.append((ky, kx))
    T = len(kept)
    assert T >= 1, "masked conv has no surviving taps at this size"
    masks = jnp.asarray(np.stack(mask_rows, axis=0))          # (T, 1, HW)

    # Image-block-diagonal im2col weights so one dot covers the whole batch and
    # both gate halves.  Skipped taps implement the causal mask.  The tanh half
    # is pre-scaled by 2 so a single sigmoid pass serves both gates.
    wf = jnp.stack([w[ky, kx, :, :Cout] for (ky, kx) in kept], axis=0)   # (T,Cin,Cout)
    wg = jnp.stack([w[ky, kx, :, Cout:] for (ky, kx) in kept], axis=0)   # (T,Cin,Cout)
    eye = jnp.eye(nb, dtype=jnp.float32)
    wf_big = jnp.einsum("ij,tcd->idtjc", eye, 2.0 * wf).reshape(nb * Cout, T * nb * Cin)
    wg_big = jnp.einsum("ij,tcd->idtjc", eye, wg).reshape(nb * Cout, T * nb * Cin)
    w_big = jnp.concatenate([wf_big, wg_big], axis=0)         # (2*nb*Cout, T*nb*Cin)
    b_big = jnp.concatenate([jnp.tile(2.0 * b[:Cout], nb),
                             jnp.tile(b[Cout:], nb)]).reshape(2 * nb * Cout, 1)

    scale_big = jnp.tile(bn_scale.astype(jnp.float32), nb).reshape(nb * Cout, 1)
    bias_big = jnp.tile(bn_bias.astype(jnp.float32), nb).reshape(nb * Cout, 1)

    x_flat = x_nchw.reshape(N * Cin, HW)          # free reshape, stays NCHW order
    TK = T * nb * Cin

    kernel = _make_kernel(tuple(offsets), nb * Cout)

    out = pl.pallas_call(
        kernel,
        out_shape=jax.ShapeDtypeStruct((N * Cout, HW), jnp.float32),
        grid_spec=pltpu.PrefetchScalarGridSpec(
            num_scalar_prefetch=0,
            grid=(N // nb,),                       # == (1,) by default: whole batch in one step
            in_specs=[
                pl.BlockSpec((nb * Cin, HW), lambda n: (n, 0)),
                pl.BlockSpec((2 * nb * Cout, TK), lambda n: (0, 0)),
                pl.BlockSpec((2 * nb * Cout, 1), lambda n: (0, 0)),
                pl.BlockSpec((nb * Cout, 1), lambda n: (0, 0)),
                pl.BlockSpec((nb * Cout, 1), lambda n: (0, 0)),
                pl.BlockSpec((T, 1, HW), lambda n: (0, 0, 0)),
            ],
            out_specs=pl.BlockSpec((nb * Cout, HW), lambda n: (n, 0)),
        ),
        compiler_params=pltpu.CompilerParams(
            dimension_semantics=("arbitrary",)),
    )(x_flat, w_big, b_big, scale_big, bias_big, masks)

    return out.reshape(N, Cout, H, W)


def ref_forward(x, w, b, bn_scale, bn_bias):
    """Pure-JAX reference with identical semantics (NCHW, all-tap loop)."""
    N, Cin, H, W = x.shape
    k = w.shape[0]
    C2 = w.shape[3]
    Cout = C2 // 2
    pad = k // 2
    xpad = jnp.pad(x, ((0, 0), (0, 0), (pad, pad), (pad, pad)))
    acc = jnp.zeros((N, C2, H, W), jnp.float32)
    for dy in range(k):
        for dx in range(k):
            acc = acc + jnp.einsum("nchw,cd->ndhw",
                                   xpad[:, :, dy:dy + H, dx:dx + W], w[dy, dx],
                                   precision="highest")
    acc = acc + b.reshape(1, C2, 1, 1)
    xf = jnp.tanh(acc[:, :Cout])
    xg = jax.nn.sigmoid(acc[:, Cout:])
    return x + (xf * xg) * bn_scale.reshape(1, Cout, 1, 1) + bn_bias.reshape(1, Cout, 1, 1)


if __name__ == "__main__":
    N, C, H, W = 2, 4, 16, 16          # in_channels == out_channels == 4
    KS = 3
    Cout = C
    C2 = 2 * Cout

    key = jax.random.PRNGKey(0)
    kx, kw, kb, kg, kbeta = jax.random.split(key, 5)

    x = jax.random.normal(kx, (N, C, H, W), jnp.float32)

    # MaskedConv('A') weight, stored as (k, k, Cin, 2*Cout), mask applied once.
    w_raw = jax.random.normal(kw, (KS, KS, C, C2), jnp.float32) * 0.2
    mask = np.ones((KS, KS, 1, 1), np.float32)
    mask[KS // 2, KS // 2:, 0, 0] = 0.0      # type 'A': block centre and to the right
    mask[KS // 2 + 1:, :, 0, 0] = 0.0        # block all rows below centre
    w = w_raw * jnp.asarray(mask)
    b = jax.random.normal(kb, (C2,), jnp.float32) * 0.1

    # BatchNorm2d(out_channels) params, inference mode:
    # running_mean = 0, running_var = 1, gamma/beta deterministic-random.
    gamma = 1.0 + 0.1 * jax.random.normal(kg, (Cout,), jnp.float32)
    beta = 0.1 * jax.random.normal(kbeta, (Cout,), jnp.float32)
    running_mean = jnp.zeros((Cout,), jnp.float32)
    running_var = jnp.ones((Cout,), jnp.float32)
    eps = 1e-5
    bn_scale = gamma / jnp.sqrt(running_var + eps)
    bn_bias = beta - running_mean * bn_scale

    out = gated_res_forward(x, w, b, bn_scale, bn_bias)
    out = jax.block_until_ready(out)

    ref = ref_forward(x, w, b, bn_scale, bn_bias)
    np.testing.assert_allclose(np.asarray(out), np.asarray(ref),
                               rtol=1e-3, atol=1e-3)

    print("KERNEL_OK")
</pallas_src>

<mosaic_0001>
module attributes {stable_mosaic.version = 11 : i64} {
  func.func @kernel(%arg0: i32, %arg1: memref<8x256xf32, #tpu.memory_space<vmem>>, %arg2: memref<16x32xf32, #tpu.memory_space<vmem>>, %arg3: memref<16x1xf32, #tpu.memory_space<vmem>>, %arg4: memref<8x1xf32, #tpu.memory_space<vmem>>, %arg5: memref<8x1xf32, #tpu.memory_space<vmem>>, %arg6: memref<4x1x256xf32, #tpu.memory_space<vmem>>, %arg7: memref<8x256xf32, #tpu.memory_space<vmem>>) attributes {dimension_semantics = [#tpu.dimension_semantics<arbitrary>], iteration_bounds = array<i64: 1>, scalar_prefetch = 0 : i64, scratch_operands = 0 : i64, tpu.core_type = #tpu.core_type<tc>, window_params = [{transform_indices = @transform_0, window_bounds = array<i64: 8, 256>}, {pipeline_mode = #tpu.pipeline_mode<synchronous>, transform_indices = @transform_1, window_bounds = array<i64: 16, 32>}, {pipeline_mode = #tpu.pipeline_mode<synchronous>, transform_indices = @transform_2, window_bounds = array<i64: 16, 1>}, {pipeline_mode = #tpu.pipeline_mode<synchronous>, transform_indices = @transform_3, window_bounds = array<i64: 8, 1>}, {pipeline_mode = #tpu.pipeline_mode<synchronous>, transform_indices = @transform_4, window_bounds = array<i64: 8, 1>}, {pipeline_mode = #tpu.pipeline_mode<synchronous>, transform_indices = @transform_5, window_bounds = array<i64: 4, 1, 256>}, {transform_indices = @transform_6, window_bounds = array<i64: 8, 256>}]} {
    %c0 = arith.constant 0 : index
    %c0_0 = arith.constant 0 : index
    %0 = vector.load %arg1[%c0, %c0_0] : memref<8x256xf32, #tpu.memory_space<vmem>>, vector<8x256xf32>
    %c17_i32 = arith.constant 17 : i32
    %1 = tpu.dynamic_rotate %0 by %c17_i32 dim 1 : vector<8x256xf32>, i32 -> vector<8x256xf32>
    %c0_1 = arith.constant 0 : index
    %c0_2 = arith.constant 0 : index
    %c0_3 = arith.constant 0 : index
    %2 = vector.load %arg6[%c0_1, %c0_2, %c0_3] : memref<4x1x256xf32, #tpu.memory_space<vmem>>, vector<1x1x256xf32>
    %3 = vector.shape_cast %2 : vector<1x1x256xf32> to vector<1x256xf32>
    %4 = vector.broadcast %3 : vector<1x256xf32> to vector<8x256xf32>
    %5 = arith.mulf %1, %4 : vector<8x256xf32>
    %c16_i32 = arith.constant 16 : i32
    %6 = tpu.dynamic_rotate %0 by %c16_i32 dim 1 : vector<8x256xf32>, i32 -> vector<8x256xf32>
    %c1 = arith.constant 1 : index
    %c0_4 = arith.constant 0 : index
    %c0_5 = arith.constant 0 : index
    %7 = vector.load %arg6[%c1, %c0_4, %c0_5] : memref<4x1x256xf32, #tpu.memory_space<vmem>>, vector<1x1x256xf32>
    %8 = vector.shape_cast %7 : vector<1x1x256xf32> to vector<1x256xf32>
    %9 = vector.broadcast %8 : vector<1x256xf32> to vector<8x256xf32>
    %10 = arith.mulf %6, %9 : vector<8x256xf32>
    %c15_i32 = arith.constant 15 : i32
    %11 = tpu.dynamic_rotate %0 by %c15_i32 dim 1 : vector<8x256xf32>, i32 -> vector<8x256xf32>
    %c2 = arith.constant 2 : index
    %c0_6 = arith.constant 0 : index
    %c0_7 = arith.constant 0 : index
    %12 = vector.load %arg6[%c2, %c0_6, %c0_7] : memref<4x1x256xf32, #tpu.memory_space<vmem>>, vector<1x1x256xf32>
    %13 = vector.shape_cast %12 : vector<1x1x256xf32> to vector<1x256xf32>
    %14 = vector.broadcast %13 : vector<1x256xf32> to vector<8x256xf32>
    %15 = arith.mulf %11, %14 : vector<8x256xf32>
    %c1_i32 = arith.constant 1 : i32
    %16 = tpu.dynamic_rotate %0 by %c1_i32 dim 1 : vector<8x256xf32>, i32 -> vector<8x256xf32>
    %c3 = arith.constant 3 : index
    %c0_8 = arith.constant 0 : index
    %c0_9 = arith.constant 0 : index
    %17 = vector.load %arg6[%c3, %c0_8, %c0_9] : memref<4x1x256xf32, #tpu.memory_space<vmem>>, vector<1x1x256xf32>
    %18 = vector.shape_cast %17 : vector<1x1x256xf32> to vector<1x256xf32>
    %19 = vector.broadcast %18 : vector<1x256xf32> to vector<8x256xf32>
    %20 = arith.mulf %16, %19 : vector<8x256xf32>
    %21 = tpu.concatenate %5, %10, %15, %20 in 0 : vector<8x256xf32>, vector<8x256xf32>, vector<8x256xf32>, vector<8x256xf32> -> vector<32x256xf32>
    %c0_10 = arith.constant 0 : index
    %c0_11 = arith.constant 0 : index
    %22 = vector.load %arg2[%c0_10, %c0_11] : memref<16x32xf32, #tpu.memory_space<vmem>>, vector<16x32xf32>
    %cst = arith.constant dense<0.000000e+00> : vector<16x256xf32>
    %23 = tpu.matmul %22, %21, %cst {dimension_numbers = #tpu.dot_dimension_numbers<[1], [0], [0], [1], [0, 0, 1, 1], [], []>} : vector<16x32xf32>, vector<32x256xf32>, vector<16x256xf32> -> vector<16x256xf32>
    %c0_12 = arith.constant 0 : index
    %c0_13 = arith.constant 0 : index
    %24 = vector.load %arg3[%c0_12, %c0_13] : memref<16x1xf32, #tpu.memory_space<vmem>>, vector<16x1xf32>
    %25 = vector.broadcast %24 : vector<16x1xf32> to vector<16x256xf32>
    %26 = arith.addf %23, %25 : vector<16x256xf32>
    %27 = arith.negf %26 : vector<16x256xf32>
    %28 = math.exp %27 : vector<16x256xf32>
    %cst_14 = arith.constant 1.000000e+00 : f32
    %29 = vector.broadcast %cst_14 : f32 to vector<16x256xf32>
    %30 = arith.addf %29, %28 : vector<16x256xf32>
    %31 = arith.divf %29, %30 : vector<16x256xf32>
    %32 = vector.extract_strided_slice %31 {offsets = [0, 0], sizes = [8, 256], strides = [1, 1]} : vector<16x256xf32> to vector<8x256xf32>
    %cst_15 = arith.constant 2.000000e+00 : f32
    %33 = vector.broadcast %cst_15 : f32 to vector<8x256xf32>
    %34 = arith.mulf %33, %32 : vector<8x256xf32>
    %cst_16 = arith.constant 1.000000e+00 : f32
    %35 = vector.broadcast %cst_16 : f32 to vector<8x256xf32>
    %36 = arith.subf %34, %35 : vector<8x256xf32>
    %37 = vector.extract_strided_slice %31 {offsets = [8, 0], sizes = [8, 256], strides = [1, 1]} : vector<16x256xf32> to vector<8x256xf32>
    %38 = arith.mulf %36, %37 : vector<8x256xf32>
    %c0_17 = arith.constant 0 : index
    %c0_18 = arith.constant 0 : index
    %39 = vector.load %arg4[%c0_17, %c0_18] : memref<8x1xf32, #tpu.memory_space<vmem>>, vector<8x1xf32>
    %40 = vector.broadcast %39 : vector<8x1xf32> to vector<8x256xf32>
    %41 = arith.mulf %38, %40 : vector<8x256xf32>
    %42 = arith.addf %0, %41 : vector<8x256xf32>
    %c0_19 = arith.constant 0 : index
    %c0_20 = arith.constant 0 : index
    %43 = vector.load %arg5[%c0_19, %c0_20] : memref<8x1xf32, #tpu.memory_space<vmem>>, vector<8x1xf32>
    %44 = vector.broadcast %43 : vector<8x1xf32> to vector<8x256xf32>
    %45 = arith.addf %42, %44 : vector<8x256xf32>
    %c0_21 = arith.constant 0 : index
    %c0_22 = arith.constant 0 : index
    %46 = vector.load %arg7[%c0_21, %c0_22] : memref<8x256xf32, #tpu.memory_space<vmem>>, vector<8x256xf32>
    tpu.vector_store %arg7[%c0_21, %c0_22], %45 {strides = array<i32>} : memref<8x256xf32, #tpu.memory_space<vmem>>, vector<8x256xf32>,
    return
  }
  func.func @transform_0(%arg0: i32) -> (i32, i32) {
    %c0_i32 = arith.constant 0 : i32
    %c0_i32_0 = arith.constant 0 : i32
    return %arg0, %c0_i32 : i32, i32
  }
  func.func @transform_1(%arg0: i32) -> (i32, i32) {
    %c0_i32 = arith.constant 0 : i32
    %c0_i32_0 = arith.constant 0 : i32
    %c0_i32_1 = arith.constant 0 : i32
    return %c0_i32, %c0_i32_0 : i32, i32
  }
  func.func @transform_2(%arg0: i32) -> (i32, i32) {
    %c0_i32 = arith.constant 0 : i32
    %c0_i32_0 = arith.constant 0 : i32
    %c0_i32_1 = arith.constant 0 : i32
    return %c0_i32, %c0_i32_0 : i32, i32
  }
  func.func @transform_3(%arg0: i32) -> (i32, i32) {
    %c0_i32 = arith.constant 0 : i32
    %c0_i32_0 = arith.constant 0 : i32
    %c0_i32_1 = arith.constant 0 : i32
    return %c0_i32, %c0_i32_0 : i32, i32
  }
  func.func @transform_4(%arg0: i32) -> (i32, i32) {
    %c0_i32 = arith.constant 0 : i32
    %c0_i32_0 = arith.constant 0 : i32
    %c0_i32_1 = arith.constant 0 : i32
    return %c0_i32, %c0_i32_0 : i32, i32
  }
  func.func @transform_5(%arg0: i32) -> (i32, i32, i32) {
    %c0_i32 = arith.constant 0 : i32
    %c0_i32_0 = arith.constant 0 : i32
    %c0_i32_1 = arith.constant 0 : i32
    %c0_i32_2 = arith.constant 0 : i32
    return %c0_i32, %c0_i32_0, %c0_i32_1 : i32, i32, i32
  }
  func.func @transform_6(%arg0: i32) -> (i32, i32) {
    %c0_i32 = arith.constant 0 : i32
    %c0_i32_0 = arith.constant 0 : i32
    return %arg0, %c0_i32 : i32, i32
  }
}

</mosaic_0001>

<bundles_post_ra>
// kernel: tpu_custom_call.1
= control target key start
LH: loop header
LB: loop body
LE: loop exit
PB: predicated region body
PF: predicated region fallthrough
CT: control target
= control target key end

     0   :  { %11 = vsyncpa [#allocation3], 0  ;;  %s479_s0 = inlined_call_operand.vmem [shape: f32[8,256], index: 0, kind: input, shape index: {}]   ;;  %s480_s1 = inlined_call_operand.vmem [shape: f32[16,32], index: 1, kind: input, shape index: {}]   ;;  %s481_s2 = inlined_call_operand.vmem [shape: f32[16,1], index: 2, kind: input, shape index: {}]   ;;  %s482_s3 = inlined_call_operand.vmem [shape: f32[8,1], index: 3, kind: input, shape index: {}]   ;;  %s483_s4 = inlined_call_operand.vmem [shape: f32[8,1], index: 4, kind: input, shape index: {}]   ;;  %s484_s5 = inlined_call_operand.hbm [shape: f32[4,1,256], index: 5, kind: input, shape index: {}]   ;;  %s485_s6 = inlined_call_operand.hbm [shape: f32[8,256], index: 6, kind: output, shape index: {}]  }
   0x1   :  { %12 = vsyncpa [#allocation4], 0  ;;  %s27_s23 = sshll.u32 %s484_s5, 4  ;;  %s391_s24 = smov [#allocation2]   ;;  %s28_s23 = int_to_ptr.hbm [resolvable:$true] %s27_s23 }
   0x2   :  { %s29_s25 = sshll.u32 %s391_s24, 4  ;;  %s392_s26 = smov 32   ;;  %s30_s25 = int_to_ptr.vmem [resolvable:$true] %s29_s25 }
   0x3   :  { %s393_s27 = smov 2  }
   0x4   :  { %35 = dma.hbm_to_vmem [thread:$0]  %s28_s23, 128, %s30_s25, [#allocation3], %s392_s26, %s392_s26, %s393_s27  }
   0x5   :  { %387 = dma.done.wait [#allocation3], 128  }
   0x6   :  { %388 = vsyncadd [#allocation3], 4294967168  ;;  %v441_v0 = vld [vmem:[%s479_s0] sm:$0xff]  ;;  %s394_s30 = smov 15   ;;  %s395_s7 = smov 1   ;;  %v449_v1 = vld [vmem:[%s479_s0 + $0x8] sm:$0xff]  ;;  %v46_v10 = vlaneseq }
   0x7   :  { %75 = vrot.lane.b32.xlu1 %v441_v0, %s394_s30  ;;  %91 = vrot.lane.b32.xlu0 %v441_v0, %s395_s7  ;;  %s396_s5 = smov 16   ;;  %s397_s10 = smov 17   ;;  %v110_v2 = vld [vmem:[%s481_s2 + $0x8] sm:$0xff]  ;;  %v109_v3 = vld [vmem:[%s481_s2] sm:$0xff]  ;;  %v398_v4 = vmov 0   ;;  %vm121_vm4 = vcmask 261120  }
   0x8   :  { %59 = vrot.lane.b32.xlu2 %v441_v0, %s396_s5  ;;  %321 = vset.pattern.permute.xlu0 %v398_v4  ;;  %v256_v5 = vld [vmem:[%s482_s3] sm:$0xff]  ;;  %v47_v12 = vand.u32 127, %v46_v10  ;;  %v108_v46 = vld [vmem:[%s480_s1 + $0x8] sm:$0xff]  ;;  %s283_s22 = sshll.u32 %s485_s6, 4  ;;  %s284_s22 = int_to_ptr.hbm [resolvable:$true] %s283_s22 }
   0x9   :  { %320 = vset.pattern.permute.xlu2 %v398_v4  ;;  %322 = vset.pattern.permute.xlu1 %v398_v4  ;;  %v266_v7 = vld [vmem:[%s483_s4] sm:$0xff] }
   0xa   :  { %v99_v11 = vld [vmem:[#allocation2 + $0x6] sm:$0x3]  ;;  %v83_v13 = vld [vmem:[#allocation2 + $0x4] sm:$0x3]  ;;  %vm79_vm0 = vcmp.lt.s32.totalorder %v47_v12, 15  ;;  %vm95_vm1 = vcmp.lt.s32.totalorder %v47_v12, 1 }
   0xb   :  { %v101_v14 = vperm.slane %v99_v11, 0  ;;  %v102_v15 = vperm.slane %v99_v11, 1  ;;  %v67_v17 = vld [vmem:[#allocation2 + $0x2] sm:$0x3]  ;;  %vm63_vm2 = vcmp.lt.s32.totalorder %v47_v12, 16  ;;  %v85_v20 = vperm.slane %v83_v13, 0 }
   0xc   :  { %v86_v24 = vperm.slane %v83_v13, 1  ;;  %v69_v28 = vperm.slane %v67_v17, 0  ;;  %v70_v30 = vperm.slane %v67_v17, 1  ;;  %v51_v31 = vld [vmem:[#allocation2] sm:$0x3]  ;;  %vm48_vm3 = vcmp.lt.s32.totalorder %v47_v12, 17 }
   0xd   :  { %v53_v36 = vperm.slane %v51_v31, 0  ;;  %v54_v37 = vperm.slane %v51_v31, 1  ;;  %v107_v45 = vld [vmem:[%s480_s1] sm:$0xff]  ;;  %s399_s1 = smov [#allocation5]  }
   0xe   :  { %s281_s19 = sshll.u32 %s399_s1, 4  ;;  %s282_s19 = int_to_ptr.vmem [resolvable:$true] %s281_s19 }
   0xf   :  { %77 = vrot.lane.b32.xlu1 %v449_v1, %s394_s30  ;;  %93 = vrot.lane.b32.xlu0 %v449_v1, %s395_s7 }
  0x10   :  { %61 = vrot.lane.b32.xlu2 %v449_v1, %s396_s5 }
  0x17   :  { %44 = vrot.lane.b32.xlu1 %v449_v1, %s397_s10  ;;  %42 = vrot.lane.b32.xlu0 %v441_v0, %s397_s10 }
  0x18   :  { %113 = vperm.xlu2 %320, %v109_v3  }
  0x1f   :  { %118 = vperm.xlu0 %321, %v110_v2   ;;  %259 = vperm.xlu1 %322, %v256_v5  }
  0x20   :  { %269 = vperm.xlu2 %320, %v266_v7  }
  0x62   :  { %v60_v6 = vpop.permute.xlu2 %59 }
  0x6a   :  { %v62_v16 = vpop.permute.xlu2 %61 }
  0x6b   :  { %v65_v29 = vsel %vm63_vm2, %v62_v16, %v60_v6  ;;  %v64_v32 = vsel %vm63_vm2, %v60_v6, %v62_v16 }
  0x6c   :  { %v73_v35 = vmul.f32 %v69_v28, %v65_v29  ;;  %v74_v38 = vmul.f32 %v70_v30, %v64_v32 }
  0x72   :  { %v114_v47 = vpop.permute.xlu2 %113 }
  0x79   :  { %v76_v8 = vpop.permute.xlu1 %75  ;;  %v92_v9 = vpop.permute.xlu0 %91 }
  0x81   :  { %v78_v18 = vpop.permute.xlu1 %77  ;;  %v94_v19 = vpop.permute.xlu0 %93 }
  0x82   :  { %v81_v21 = vsel %vm79_vm0, %v78_v18, %v76_v8  ;;  %v96_v22 = vsel %vm95_vm1, %v92_v9, %v94_v19  ;;  %v97_v23 = vsel %vm95_vm1, %v94_v19, %v92_v9  ;;  %v80_v25 = vsel %vm79_vm0, %v76_v8, %v78_v18 }
  0x83   :  { %v105_v26 = vmul.f32 %v101_v14, %v97_v23  ;;  %v106_v27 = vmul.f32 %v102_v15, %v96_v22  ;;  %v89_v33 = vmul.f32 %v85_v20, %v81_v21  ;;  %v90_v34 = vmul.f32 %v86_v24, %v80_v25 }
  0x85   :  { %140 = vmatpush.msra.mxu0 %v105_v26  ;;  %303 = vmatpush.msra.mxu2 %v105_v26 }
  0x86   :  { %163 = vmatpush.msra.mxu1 %v106_v27  ;;  %307 = vmatpush.msra.mxu3 %v106_v27 }
  0x87   :  { %141 = vmatpush.msra.mxu0 %v89_v33  ;;  %304 = vmatpush.msra.mxu2 %v89_v33 }
  0x88   :  { %164 = vmatpush.msra.mxu1 %v90_v34  ;;  %308 = vmatpush.msra.mxu3 %v90_v34 }
  0x89   :  { %v45_v39 = vpop.permute.xlu1 %44  ;;  %142 = vmatpush.msra.mxu0 %v73_v35  ;;  %305 = vmatpush.msra.mxu2 %v73_v35  ;;  %v43_v40 = vpop.permute.xlu0 %42 }
  0x8a   :  { %165 = vmatpush.msra.mxu1 %v74_v38  ;;  %309 = vmatpush.msra.mxu3 %v74_v38  ;;  %v49_v41 = vsel %vm48_vm3, %v43_v40, %v45_v39  ;;  %v50_v42 = vsel %vm48_vm3, %v45_v39, %v43_v40 }
  0x8b   :  { %v57_v43 = vmul.f32 %v53_v36, %v50_v42  ;;  %v58_v44 = vmul.f32 %v54_v37, %v49_v41 }
  0x8d   :  { %143 = vmatpush.msra.mxu0 %v57_v43  ;;  %306 = vmatpush.msra.mxu2 %v57_v43 }
  0x8e   :  { %166 = vmatpush.msra.mxu1 %v58_v44  ;;  %310 = vmatpush.msra.mxu3 %v58_v44 }
  0x8f   :  { %293 = vmatmul.msk.f32.vlgmr.msra.gmra.mxu0 %vm121_vm4, %v107_v45  ;;  %294 = vmatmul.msk.f32.vlgmr.msra.gmra.mxu2 %vm121_vm4, %v108_v46 }
  0x90   :  { %295 = vmatmul.msk.f32.vlgmr.msra.gmra.mxu1 %vm121_vm4, %v107_v45  ;;  %296 = vmatmul.msk.f32.vlgmr.msra.gmra.mxu3 %vm121_vm4, %v108_v46 }
  0x91   :  { %v119_v54 = vpop.permute.xlu0 %118 }
 0x10c   :  { %v145_v48 = vpop.f32.mrf.mxu0 }
 0x10d   :  { %v146_v49 = vadd.f32 %v145_v48, %v114_v47  ;;  %v168_v50 = vpop.f32.mrf.mxu1 }
 0x10e   :  { %v169_v51 = vadd.f32 %v168_v50, %v114_v47  ;;  %v260_v47 = vpop.permute.xlu1 %259 }
 0x10f   :  { %v297_v52 = vmul.f32 -1.442695, %v146_v49 }
 0x110   :  { %v298_v53 = vmul.f32 -1.442695, %v169_v51 }
 0x111   :  { %323 = vpow2.f32 %v297_v52 }
 0x112   :  { %325 = vpow2.f32 %v298_v53  ;;  %v148_v55 = vpop.f32.mrf.mxu2 }
 0x113   :  { %v171_v56 = vpop.f32.mrf.mxu3  ;;  %v149_v57 = vadd.f32 %v148_v55, %v119_v54 }
 0x114   :  { %v172_v58 = vadd.f32 %v171_v56, %v119_v54 }
 0x115   :  { %v299_v59 = vmul.f32 -1.442695, %v149_v57  ;;  %v270_v57 = vpop.permute.xlu2 %269 }
 0x116   :  { %v300_v60 = vmul.f32 -1.442695, %v172_v58 }
 0x117   :  { %v324_v61 = vpop.eup %323  ;;  %327 = vpow2.f32 %v299_v59 }
 0x118   :  { %v326_v62 = vpop.eup %325  ;;  %v186_v63 = vadd.f32 1.0, %v324_v61  ;;  %329 = vpow2.f32 %v300_v60 }
 0x119   :  { %v187_v2 = vadd.f32 1.0, %v326_v62 }
 0x11a   :  { %331 = vrcp.f32 %v186_v63  ;;  %v199_v12 = vand.u32 2147483647, %v186_v63  ;;  %v201_v13 = vand.u32 2147483648, %v186_v63  ;;  %vm195_vm6 = vweird.f32 %v186_v63 }
 0x11b   :  { %333 = vrcp.f32 %v187_v2  ;;  %v214_v15 = vand.u32 2147483647, %v187_v2  ;;  %v216_v16 = vand.u32 2147483648, %v187_v2  ;;  %vm210_vm7 = vweird.f32 %v187_v2 }
 0x11c   :  { %vm200_vm9 = vcmp.eq.f32.partialorder %v199_v12, 8.507059e+37  ;;  %v202_v22 = vor.u32 1.1754944e-38, %v201_v13 }
 0x11d   :  { %v328_v3 = vpop.eup %327  ;;  %vm215_vm11 = vcmp.eq.f32.partialorder %v214_v15, 8.507059e+37  ;;  %v217_v25 = vor.u32 1.1754944e-38, %v216_v16 }
 0x11e   :  { %v330_v4 = vpop.eup %329  ;;  %v188_v5 = vadd.f32 1.0, %v328_v3 }
 0x11f   :  { %v189_v6 = vadd.f32 1.0, %v330_v4 }
 0x120   :  { %v332_v7 = vpop.eup %331  ;;  %335 = vrcp.f32 %v188_v5  ;;  %v229_v29 = vand.u32 2147483647, %v188_v5  ;;  %v231_v30 = vand.u32 2147483648, %v188_v5  ;;  %vm225_vm15 = vweird.f32 %v188_v5 }
 0x121   :  { %v334_v8 = vpop.eup %333  ;;  %v191_v9 = vmul.f32 %v332_v7, %v186_v63  ;;  %337 = vrcp.f32 %v189_v6  ;;  %vm196_vm5 = vweird.f32 %v332_v7  ;;  %v246_v34 = vand.u32 2147483648, %v189_v6 }
 0x122   :  { %v206_v10 = vmul.f32 %v334_v8, %v187_v2  ;;  %vm211_vm8 = vweird.f32 %v334_v8  ;;  %vm197_vm10 = vmor %vm195_vm6, %vm196_vm5  ;;  %v244_v39 = vand.u32 2147483647, %v189_v6  ;;  %v232_v42 = vor.u32 1.1754944e-38, %v231_v30 }
 0x123   :  { %v192_v11 = vsub.f32 1.0, %v191_v9  ;;  %vm212_vm12 = vmor %vm210_vm7, %vm211_vm8  ;;  %vm240_vm1 = vweird.f32 %v189_v6  ;;  %vm230_vm2 = vcmp.eq.f32.partialorder %v229_v29, 8.507059e+37  ;;  %v247_v45 = vor.u32 1.1754944e-38, %v246_v34 }
 0x124   :  { %v207_v14 = vsub.f32 1.0, %v206_v10  ;;  %vm245_vm4 = vcmp.eq.f32.partialorder %v244_v39, 8.507059e+37 }
 0x125   :  { %v193_v17 = vmul.f32 %v332_v7, %v192_v11 }
 0x126   :  { %v336_v18 = vpop.eup %335  ;;  %v208_v19 = vmul.f32 %v334_v8, %v207_v14 }
 0x127   :  { %v338_v20 = vpop.eup %337  ;;  %v194_v21 = vadd.f32 %v332_v7, %v193_v17  ;;  %v221_v23 = vmul.f32 %v336_v18, %v188_v5  ;;  %vm226_vm13 = vweird.f32 %v336_v18 }
 0x128   :  { %v209_v24 = vadd.f32 %v334_v8, %v208_v19  ;;  %v236_v26 = vmul.f32 %v338_v20, %v189_v6  ;;  %vm241_vm14 = vweird.f32 %v338_v20  ;;  %vm227_vm0 = vmor %vm225_vm15, %vm226_vm13 }
 0x129   :  { %v198_v27 = vsel %vm197_vm10, %v332_v7, %v194_v21  ;;  %v222_v28 = vsub.f32 1.0, %v221_v23  ;;  %vm242_vm3 = vmor %vm240_vm1, %vm241_vm14 }
 0x12a   :  { %v203_v31 = vsel %vm200_vm9, %v202_v22, %v198_v27  ;;  %v213_v32 = vsel %vm212_vm12, %v334_v8, %v209_v24  ;;  %v237_v33 = vsub.f32 1.0, %v236_v26 }
 0x12b   :  { %v218_v35 = vsel %vm215_vm11, %v217_v25, %v213_v32  ;;  %v223_v36 = vmul.f32 %v336_v18, %v222_v28  ;;  %v250_v37 = vmul.f32 2.0, %v203_v31 }
 0x12c   :  { %v238_v38 = vmul.f32 %v338_v20, %v237_v33  ;;  %v251_v40 = vmul.f32 2.0, %v218_v35 }
 0x12d   :  { %v224_v41 = vadd.f32 %v336_v18, %v223_v36  ;;  %v301_v46 = vadd.f32 -1.0, %v250_v37 }
 0x12e   :  { %v239_v43 = vadd.f32 %v338_v20, %v238_v38  ;;  %v302_v50 = vadd.f32 -1.0, %v251_v40 }
 0x12f   :  { %v228_v44 = vsel %vm227_vm0, %v336_v18, %v224_v41 }
 0x130   :  { %v233_v48 = vsel %vm230_vm2, %v232_v42, %v228_v44  ;;  %v243_v49 = vsel %vm242_vm3, %v338_v20, %v239_v43 }
 0x131   :  { %v248_v51 = vsel %vm245_vm4, %v247_v45, %v243_v49  ;;  %v254_v52 = vmul.f32 %v301_v46, %v233_v48 }
 0x132   :  { %v255_v53 = vmul.f32 %v302_v50, %v248_v51 }
 0x133   :  { %v262_v54 = vmul.f32 %v260_v47, %v254_v52 }
 0x134   :  { %v263_v55 = vmul.f32 %v260_v47, %v255_v53 }
 0x135   :  { %v264_v56 = vadd.f32 %v262_v54, %v441_v0 }
 0x136   :  { %v265_v58 = vadd.f32 %v263_v55, %v449_v1 }
 0x137   :  { %v272_v59 = vadd.f32 %v270_v57, %v264_v56 }
 0x138   :  { %v273_v60 = vadd.f32 %v270_v57, %v265_v58 }
 0x139   :  { %274 = vst [vmem:[#allocation5] sm:$0xff] %v272_v59 }
 0x13a   :  { %275 = vst [vmem:[#allocation5 + $0x8] sm:$0xff] %v273_v60 }
 0x13b   :  { %286 = dma.vmem_to_hbm [thread:$0]  %s282_s19, 256, %s284_s22, [#allocation4]  }
 0x13c   :  { %389 = dma.done.wait [#allocation4], 256  }
 0x13d   :  { %390 = vsyncadd [#allocation4], 4294967040 }
 0x13e   :  { %291 = vsyncpa [#allocation3], 1 }
 0x13f   :  { %292 = vsyncpa [#allocation4], 1 }

</bundles_post_ra>
